<compile_context>
chip_gen: v6e
topology: v6e:2x2x1
jax: 0.10.0
libtpu: 0.0.40
codegen_flags: <defaults>
</compile_context>

<pallas_src>
import functools

import jax
import jax.numpy as jnp
from jax.experimental import pallas as pl
from jax.experimental.pallas import tpu as pltpu

TM_PREF = 256                      # activation rows per matmul tile
TN_PREF = 512                      # output channels per tile
VMEM_LIMIT_BYTES = 48 * 1024 * 1024


# ---------------------------------------------------------------------------
# Border-mask helper: 1.0 on interior pixels of a padded (Hp, Wp) image,
# 0.0 on the 1-pixel border.  Shape (Hp*Wp, 1) float32.
# ---------------------------------------------------------------------------
def _interior_mask(Hp, Wp, dtype=jnp.float32):
    h = (jnp.arange(Hp) >= 1) & (jnp.arange(Hp) <= Hp - 2)
    w = (jnp.arange(Wp) >= 1) & (jnp.arange(Wp) <= Wp - 2)
    m = h[:, None] & w[None, :]
    return m.astype(dtype).reshape(Hp * Wp, 1)


def _pad_hw(x):
    """Add the 1-pixel zero spatial border (N,H,W,C) -> (N,H+2,W+2,C)."""
    return jnp.pad(x, ((0, 0), (1, 1), (1, 1), (0, 0)))


# ---------------------------------------------------------------------------
# Generic fused matmul (+BN scale/bias, + optional residual, + optional border
# mask, + optional ReLU).  Single reduction step (tk = K): no acc scratch.
# ---------------------------------------------------------------------------
def _mm_kernel(*refs, relu, has_res, has_mask):
    a_ref, b_ref, s_ref, c_ref = refs[:4]
    idx = 4
    r_ref = m_ref = None
    if has_res:
        r_ref = refs[idx]; idx += 1
    if has_mask:
        m_ref = refs[idx]; idx += 1
    o_ref = refs[idx]

    y = jnp.dot(a_ref[...], b_ref[...], preferred_element_type=jnp.float32)
    y = y * s_ref[...] + c_ref[...]
    if has_res:
        y = y + r_ref[...].astype(jnp.float32)
    if relu:
        y = jnp.maximum(y, 0.0)
    if has_mask:
        y = y * m_ref[...]
    o_ref[...] = y.astype(o_ref.dtype)


def _fused_matmul(a, b, scale, bias, *, relu, residual=None, mask=None,
                  out_dtype=jnp.bfloat16):
    """out = mask_opt(relu_opt((a @ b) * scale + bias [+ residual]))."""
    M, K = a.shape
    K2, N = b.shape
    assert K == K2
    tm = M if M <= TM_PREF else TM_PREF
    tn = N if N <= TN_PREF else TN_PREF
    assert N % tn == 0
    grid = (pl.cdiv(M, tm), N // tn)

    in_specs = [
        pl.BlockSpec((tm, K), lambda i, j: (i, 0)),
        pl.BlockSpec((K, tn), lambda i, j: (0, j)),
        pl.BlockSpec((1, tn), lambda i, j: (0, j)),
        pl.BlockSpec((1, tn), lambda i, j: (0, j)),
    ]
    args = [a, b, scale, bias]
    extra_bytes = 0
    if residual is not None:
        in_specs.append(pl.BlockSpec((tm, tn), lambda i, j: (i, j)))
        args.append(residual)
        extra_bytes += 2 * M * N
    if mask is not None:
        in_specs.append(pl.BlockSpec((tm, 1), lambda i, j: (i, 0)))
        args.append(mask)
        extra_bytes += 4 * M

    kernel = functools.partial(_mm_kernel, relu=relu,
                               has_res=residual is not None,
                               has_mask=mask is not None)
    cost = pl.CostEstimate(
        flops=2 * M * N * K, transcendentals=0,
        bytes_accessed=int(2 * (M * K + K * N + M * N) + extra_bytes))

    return pl.pallas_call(
        kernel,
        out_shape=jax.ShapeDtypeStruct((M, N), out_dtype),
        grid_spec=pltpu.PrefetchScalarGridSpec(
            num_scalar_prefetch=0,
            grid=grid,
            in_specs=in_specs,
            out_specs=pl.BlockSpec((tm, tn), lambda i, j: (i, j)),
        ),
        compiler_params=pltpu.CompilerParams(
            dimension_semantics=("parallel", "parallel"),
            vmem_limit_bytes=VMEM_LIMIT_BYTES),
        cost_estimate=cost,
    )(*args)


# ---------------------------------------------------------------------------
# Fused stride-1 3x3 conv (+BN, +ReLU) on the flat-padded layout.
# One grid step = one whole image x one Cout tile.  The 9 taps are 9 shifted
# row-slices of the flat padded image; when Cin % 128 == 0 they are folded
# (lane-concat) into a single MXU contraction of K = 9*Cin.
# ---------------------------------------------------------------------------
def _conv3x3_flat_kernel(x_ref, w_ref, s_ref, c_ref, m_ref, o_ref, *,
                         Wp, L, M, cin, tn, fold, relu):
    x = x_ref[0]                                           # (L, Cin) bf16
    offsets = [di * Wp + dj for di in range(3) for dj in range(3)]
    if fold:
        slab = jnp.concatenate([x[o:o + M, :] for o in offsets], axis=1)
        y = jnp.dot(slab, w_ref[...], preferred_element_type=jnp.float32)
    else:
        y = jnp.zeros((M, tn), jnp.float32)
        for t, o in enumerate(offsets):
            y = y + jnp.dot(x[o:o + M, :], w_ref[t * cin:(t + 1) * cin, :],
                            preferred_element_type=jnp.float32)
    y = y * s_ref[...] + c_ref[...]
    if relu:
        y = jnp.maximum(y, 0.0)
    y = y * m_ref[...]                                     # re-zero border rows

    edge = jnp.zeros((Wp + 1, tn), o_ref.dtype)
    o_ref[0, 0:Wp + 1, :] = edge
    o_ref[0, Wp + 1:Wp + 1 + M, :] = y.astype(o_ref.dtype)
    o_ref[0, L - (Wp + 1):L, :] = edge


def conv3x3_s1_bn(xpad, wmat, scale, bias, *, relu=True):
    """3x3, stride-1 conv + BN + ReLU on padded NHWC bf16 input; padded output."""
    N, Hp, Wp, Cin = xpad.shape
    Cout = wmat.shape[-1]
    assert wmat.shape[0] == 9 * Cin
    L = Hp * Wp
    M = L - 2 * (Wp + 1)          # rows that can hold interior outputs
    xf = xpad.reshape(N, L, Cin)
    mask = _interior_mask(Hp, Wp)[Wp + 1:L - (Wp + 1)]      # (M, 1) f32

    tn = Cout if Cout <= TN_PREF else TN_PREF
    assert Cout % tn == 0
    grid = (N, Cout // tn)
    fold = (Cin % 128 == 0)
    # TODO(synk): for large images (H >> 32) add a row-band grid axis instead of
    # holding the whole padded image block in VMEM.

    kernel = functools.partial(_conv3x3_flat_kernel, Wp=Wp, L=L, M=M, cin=Cin,
                               tn=tn, fold=fold, relu=relu)
    cost = pl.CostEstimate(
        flops=2 * N * M * 9 * Cin * Cout,
        transcendentals=0,
        bytes_accessed=int(2 * (N * L * Cin + 9 * Cin * Cout + N * L * Cout)),
    )

    out = pl.pallas_call(
        kernel,
        out_shape=jax.ShapeDtypeStruct((N, L, Cout), jnp.bfloat16),
        grid_spec=pltpu.PrefetchScalarGridSpec(
            num_scalar_prefetch=0,
            grid=grid,
            in_specs=[
                pl.BlockSpec((1, L, Cin), lambda n, j: (n, 0, 0)),
                pl.BlockSpec((9 * Cin, tn), lambda n, j: (0, j)),
                pl.BlockSpec((1, tn), lambda n, j: (0, j)),
                pl.BlockSpec((1, tn), lambda n, j: (0, j)),
                pl.BlockSpec((M, 1), lambda n, j: (0, 0)),
            ],
            out_specs=pl.BlockSpec((1, L, tn), lambda n, j: (n, 0, j)),
        ),
        compiler_params=pltpu.CompilerParams(
            dimension_semantics=("parallel", "parallel"),
            vmem_limit_bytes=VMEM_LIMIT_BYTES),
        cost_estimate=cost,
    )(xf, wmat, scale, bias, mask)
    return out.reshape(N, Hp, Wp, Cout)


# ---------------------------------------------------------------------------
# 1x1 convs (stride 1) on the flat-padded layout; border mask fused.
# ---------------------------------------------------------------------------
def conv1x1_bn(xpad, wmat, scale, bias, *, relu, residual=None):
    N, Hp, Wp, Cin = xpad.shape
    Cout = wmat.shape[-1]
    L = Hp * Wp
    a = xpad.reshape(N * L, Cin)
    mask = jnp.tile(_interior_mask(Hp, Wp), (N, 1))          # (N*L, 1)
    res = residual.reshape(N * L, Cout) if residual is not None else None
    out = _fused_matmul(a, wmat, scale, bias, relu=relu, residual=res, mask=mask)
    return out.reshape(N, Hp, Wp, Cout)


def conv1x1_s2_bn(xpad, wmat, scale, bias, *, relu):
    """Downsample 1x1 stride-2 conv; output re-padded (zero borders)."""
    # TODO(synk): fold the stride-2 spatial subsample into the BlockSpec
    # index_map instead of materializing the strided slice in HBM.
    N, Hp, Wp, Cin = xpad.shape
    H, W = Hp - 2, Wp - 2
    Cout = wmat.shape[-1]
    xs = xpad[:, 1:1 + H:2, 1:1 + W:2, :]                    # interior, stride 2
    Ho, Wo = xs.shape[1], xs.shape[2]
    a = xs.reshape(N * Ho * Wo, Cin)
    out = _fused_matmul(a, wmat, scale, bias, relu=relu)
    return _pad_hw(out.reshape(N, Ho, Wo, Cout))


def conv3x3_s2_bn(xpad, wmat, scale, bias, *, relu=True):
    """3x3 stride-2 conv + BN + ReLU (3 instances per net); output re-padded."""
    # TODO(synk): fold the stride-2 taps into the fused kernel instead of
    # materializing the im2col patch matrix in HBM.
    N, Hp, Wp, Cin = xpad.shape
    Cout = wmat.shape[-1]
    Ho = (Hp - 3) // 2 + 1
    Wo = (Wp - 3) // 2 + 1
    cols = [xpad[:, di:di + 2 * (Ho - 1) + 1:2, dj:dj + 2 * (Wo - 1) + 1:2, :]
            for di in range(3) for dj in range(3)]
    patches = jnp.concatenate(cols, axis=-1).reshape(N * Ho * Wo, 9 * Cin)
    out = _fused_matmul(patches, wmat, scale, bias, relu=relu)
    return _pad_hw(out.reshape(N, Ho, Wo, Cout))


def stem_conv_bn(x_nhwc, wmat, scale, bias):
    """Modified stem: 3x3 stride-1 pad-1 conv on Cin=3, via a tiny K=27 matmul."""
    N, H, W, _ = x_nhwc.shape
    xp = _pad_hw(x_nhwc)
    cols = [xp[:, di:di + H, dj:dj + W, :] for di in range(3) for dj in range(3)]
    patches = jnp.concatenate(cols, axis=-1).reshape(N * H * W, 27)
    patches = patches.astype(jnp.bfloat16)
    out = _fused_matmul(patches, wmat, scale, bias, relu=True)
    return _pad_hw(out.reshape(N, H, W, wmat.shape[-1]))


# ---------------------------------------------------------------------------
# Tiled global average pool (padded input has zero borders, so the plain sum
# over all rows divided by H*W is exact).
# ---------------------------------------------------------------------------
def _avgpool_kernel(x_ref, o_ref, *, inv_hw):
    x = x_ref[...].astype(jnp.float32)                       # (1, L, tC)
    o_ref[...] = jnp.sum(x, axis=1, keepdims=True) * inv_hw


def global_avgpool(xpad):
    N, Hp, Wp, C = xpad.shape
    H, W = Hp - 2, Wp - 2
    L = Hp * Wp
    xf = xpad.reshape(N, L, C)
    tc = C if C <= 512 else 512
    assert C % tc == 0
    out = pl.pallas_call(
        functools.partial(_avgpool_kernel, inv_hw=1.0 / (H * W)),
        out_shape=jax.ShapeDtypeStruct((N, 1, C), jnp.float32),
        grid_spec=pltpu.PrefetchScalarGridSpec(
            num_scalar_prefetch=0,
            grid=(N, C // tc),
            in_specs=[pl.BlockSpec((1, L, tc), lambda n, c: (n, 0, c))],
            out_specs=pl.BlockSpec((1, 1, tc), lambda n, c: (n, 0, c)),
        ),
        compiler_params=pltpu.CompilerParams(
            dimension_semantics=("parallel", "parallel"),
            vmem_limit_bytes=VMEM_LIMIT_BYTES),
        cost_estimate=pl.CostEstimate(flops=N * L * C, transcendentals=0,
                                      bytes_accessed=int(2 * N * L * C + 4 * N * C)),
    )(xf)
    return out.reshape(N, C)


# ---------------------------------------------------------------------------
# Parameters (deterministic, synthetic) — pre-reshaped, bf16, matmul-ready.
# ---------------------------------------------------------------------------
def _conv_w(key, kh, kw, cin, cout):
    fan_in = kh * kw * cin
    std = (2.0 / fan_in) ** 0.5
    w = jax.random.normal(key, (kh, kw, cin, cout), jnp.float32) * std
    return w.reshape(kh * kw * cin, cout).astype(jnp.bfloat16)


def _bn(cout, eps=1e-5):
    # TODO(synk): BatchNorm is applied in inference form (running_mean=0,
    # running_var=1, gamma=1, beta=0) folded into per-channel scale/bias;
    # train-mode batch statistics of a fresh nn.Module are not reproduced.
    gamma = jnp.ones((cout,), jnp.float32)
    beta = jnp.zeros((cout,), jnp.float32)
    mean = jnp.zeros((cout,), jnp.float32)
    var = jnp.ones((cout,), jnp.float32)
    scale = gamma / jnp.sqrt(var + eps)
    bias = beta - mean * scale
    return scale.reshape(1, cout), bias.reshape(1, cout)


def build_params(key):
    keys = jax.random.split(key, 64)
    ki = iter(range(64))
    params = {
        # modified stem: Conv2d(3, 64, kernel_size=3, padding=1, bias=False)
        "stem": (_conv_w(keys[next(ki)], 3, 3, 3, 64),) + _bn(64),
        "blocks": [],
    }
    # torchvision ResNet-50 bottleneck config: (planes, num_blocks, stride)
    cfg = [(64, 3, 1), (128, 4, 2), (256, 6, 2), (512, 3, 2)]
    inplanes = 64
    for planes, blocks, stride in cfg:
        for bi in range(blocks):
            s = stride if bi == 0 else 1
            blk = {"stride": s}
            blk["conv1"] = (_conv_w(keys[next(ki)], 1, 1, inplanes, planes),) + _bn(planes)
            blk["conv2"] = (_conv_w(keys[next(ki)], 3, 3, planes, planes),) + _bn(planes)
            blk["conv3"] = (_conv_w(keys[next(ki)], 1, 1, planes, planes * 4),) + _bn(planes * 4)
            if s != 1 or inplanes != planes * 4:
                blk["down"] = (_conv_w(keys[next(ki)], 1, 1, inplanes, planes * 4),) + _bn(planes * 4)
            params["blocks"].append(blk)
            inplanes = planes * 4
    return params


# ---------------------------------------------------------------------------
# Forward pass of the `resNet50` module
# ---------------------------------------------------------------------------
def resnet50_forward(x_nchw, params):
    x_nhwc = jnp.transpose(x_nchw, (0, 2, 3, 1)).astype(jnp.bfloat16)  # NHWC bf16

    # stem: conv1(3x3, stride 1, pad 1) + bn1 + relu ; maxpool replaced by Identity
    w, s, b = params["stem"]
    x = stem_conv_bn(x_nhwc, w, s, b)             # flat-padded NHWC, zero borders

    # layer1..layer4 (bottleneck blocks, torchvision v1.5: stride on the 3x3 conv)
    for blk in params["blocks"]:
        stride = blk["stride"]
        if "down" in blk:
            dw, ds, db = blk["down"]
            if stride == 2:
                identity = conv1x1_s2_bn(x, dw, ds, db, relu=False)
            else:
                identity = conv1x1_bn(x, dw, ds, db, relu=False)
        else:
            identity = x
        w1, s1, b1 = blk["conv1"]
        out = conv1x1_bn(x, w1, s1, b1, relu=True)
        w2, s2, b2 = blk["conv2"]
        if stride == 1:
            out = conv3x3_s1_bn(out, w2, s2, b2, relu=True)
        else:
            out = conv3x3_s2_bn(out, w2, s2, b2, relu=True)
        w3, s3, b3 = blk["conv3"]
        out = conv1x1_bn(out, w3, s3, b3, relu=True, residual=identity)
        x = out

    # avgpool -> (N, 2048, 1, 1) ; fc replaced by Identity
    pooled = global_avgpool(x)                    # (N, 2048) float32
    N, C = pooled.shape
    return pooled.reshape(N, C, 1, 1)             # NCHW, matches PyTorch output


if __name__ == "__main__":
    key = jax.random.PRNGKey(0)
    pkey, xkey = jax.random.split(key)
    params = build_params(pkey)
    x = jax.random.normal(xkey, (2, 3, 16, 16), jnp.float32)  # NCHW input
    out = resnet50_forward(x, params)
    out = jax.block_until_ready(out)
    assert out.shape == (2, 2048, 1, 1) and out.dtype == jnp.float32
    print("KERNEL_OK")
</pallas_src>

<mosaic_0001>
module attributes {stable_mosaic.version = 11 : i64} {
  func.func @_mm_kernel(%arg0: i32, %arg1: i32, %arg2: memref<256x27xbf16, #tpu.memory_space<vmem>>, %arg3: memref<27x64xbf16, #tpu.memory_space<vmem>>, %arg4: memref<1x64xf32, #tpu.memory_space<vmem>>, %arg5: memref<1x64xf32, #tpu.memory_space<vmem>>, %arg6: memref<256x64xbf16, #tpu.memory_space<vmem>>) attributes {dimension_semantics = [#tpu.dimension_semantics<parallel>, #tpu.dimension_semantics<parallel>], iteration_bounds = array<i64: 2, 1>, scalar_prefetch = 0 : i64, scratch_operands = 0 : i64, tpu.core_type = #tpu.core_type<tc>, window_params = [{transform_indices = @transform_0, window_bounds = array<i64: 256, 27>}, {transform_indices = @transform_1, window_bounds = array<i64: 27, 64>}, {transform_indices = @transform_2, window_bounds = array<i64: 1, 64>}, {transform_indices = @transform_3, window_bounds = array<i64: 1, 64>}, {transform_indices = @transform_4, window_bounds = array<i64: 256, 64>}]} {
    %c0 = arith.constant 0 : index
    %c0_0 = arith.constant 0 : index
    %0 = vector.load %arg2[%c0, %c0_0] : memref<256x27xbf16, #tpu.memory_space<vmem>>, vector<256x27xbf16>
    %c0_1 = arith.constant 0 : index
    %c0_2 = arith.constant 0 : index
    %1 = vector.load %arg3[%c0_1, %c0_2] : memref<27x64xbf16, #tpu.memory_space<vmem>>, vector<27x64xbf16>
    %cst = arith.constant dense<0.000000e+00> : vector<256x64xf32>
    %2 = tpu.matmul %0, %1, %cst {dimension_numbers = #tpu.dot_dimension_numbers<[1], [0], [0], [1], [0, 0, 1, 1], [], []>} : vector<256x27xbf16>, vector<27x64xbf16>, vector<256x64xf32> -> vector<256x64xf32>
    %c0_3 = arith.constant 0 : index
    %c0_4 = arith.constant 0 : index
    %3 = vector.load %arg4[%c0_3, %c0_4] : memref<1x64xf32, #tpu.memory_space<vmem>>, vector<1x64xf32>
    %4 = vector.broadcast %3 : vector<1x64xf32> to vector<256x64xf32>
    %5 = arith.mulf %2, %4 : vector<256x64xf32>
    %c0_5 = arith.constant 0 : index
    %c0_6 = arith.constant 0 : index
    %6 = vector.load %arg5[%c0_5, %c0_6] : memref<1x64xf32, #tpu.memory_space<vmem>>, vector<1x64xf32>
    %7 = vector.broadcast %6 : vector<1x64xf32> to vector<256x64xf32>
    %8 = arith.addf %5, %7 : vector<256x64xf32>
    %cst_7 = arith.constant 0.000000e+00 : f32
    %9 = vector.broadcast %cst_7 : f32 to vector<256x64xf32>
    %10 = arith.maximumf %8, %9 : vector<256x64xf32>
    %11 = arith.truncf %10 : vector<256x64xf32> to vector<256x64xbf16>
    %c0_8 = arith.constant 0 : index
    %c0_9 = arith.constant 0 : index
    %12 = vector.load %arg6[%c0_8, %c0_9] : memref<256x64xbf16, #tpu.memory_space<vmem>>, vector<256x64xbf16>
    tpu.vector_store %arg6[%c0_8, %c0_9], %11 {strides = array<i32>} : memref<256x64xbf16, #tpu.memory_space<vmem>>, vector<256x64xbf16>,
    return
  }
  func.func @transform_0(%arg0: i32, %arg1: i32) -> (i32, i32) {
    %c0_i32 = arith.constant 0 : i32
    %c0_i32_0 = arith.constant 0 : i32
    return %arg0, %c0_i32 : i32, i32
  }
  func.func @transform_1(%arg0: i32, %arg1: i32) -> (i32, i32) {
    %c0_i32 = arith.constant 0 : i32
    %c0_i32_0 = arith.constant 0 : i32
    return %c0_i32, %arg1 : i32, i32
  }
  func.func @transform_2(%arg0: i32, %arg1: i32) -> (i32, i32) {
    %c0_i32 = arith.constant 0 : i32
    %c0_i32_0 = arith.constant 0 : i32
    return %c0_i32, %arg1 : i32, i32
  }
  func.func @transform_3(%arg0: i32, %arg1: i32) -> (i32, i32) {
    %c0_i32 = arith.constant 0 : i32
    %c0_i32_0 = arith.constant 0 : i32
    return %c0_i32, %arg1 : i32, i32
  }
  func.func @transform_4(%arg0: i32, %arg1: i32) -> (i32, i32) {
    %c0_i32 = arith.constant 0 : i32
    return %arg0, %arg1 : i32, i32
  }
}

</mosaic_0001>

<bundles_post_ra>
// kernel: tpu_custom_call.1
= control target key start
LH: loop header
LB: loop body
LE: loop exit
PB: predicated region body
PF: predicated region fallthrough
CT: control target
= control target key end

     0   :  { %s1261_s15 = smov 0   ;;  %s1263_s16 = smov 0   ;;  %s1481_s0 = inlined_call_operand.vmem [shape: bf16[512,27], index: 0, kind: input, shape index: {}]   ;;  %s1482_s1 = inlined_call_operand.vmem [shape: bf16[27,64], index: 1, kind: input, shape index: {}]   ;;  %s1483_s2 = inlined_call_operand.vmem [shape: f32[1,64], index: 2, kind: input, shape index: {}]   ;;  %s1484_s3 = inlined_call_operand.vmem [shape: f32[1,64], index: 3, kind: input, shape index: {}]   ;;  %s1485_s4 = inlined_call_operand.vmem [shape: bf16[512,64], index: 4, kind: output, shape index: {}]  }
   0x1   :  { %s1265_s17 = smov 0  }
   0x2 LB: > { %s26_s18 = sadd.s32 1, %s1229_s16  ;;  %p1003_p0 = scmp.ge.s32.totalorder %s1233_s17, 1  ;;  %s1233_s17 = sphi %s1265_s17, %s14_s17   ;;  %s1229_s16 = sphi %s1263_s16, %s1487_s16   ;;  %s1225_s15 = sphi %s1261_s15, %s1486_s15  }
   0x3   : > { %p28_p1 = scmp.ge.s32.totalorder %s26_s18, 2  ;;  %p202_p2 = scmp.lt.s32.totalorder %s1233_s17, 3 }
   0x5   : > { %s1489_s18 = smov (%p28_p1, %s26_s18), 0  ;;  %p203_p3 = pnand %p1003_p0, %p202_p2 }
   0x6   : > { %s1004_s21 = sshll.u32 (!%p203_p3), %s1225_s15, 5 }
   0x7   : > { %206 = sbr.rel (%p203_p3) target bundleno = 260 (0x104), region = 36  ;;  %p242_p4 = scmp.lt.s32.totalorder (!%p203_p3), %s1004_s21, 63 }
   0xc   : > { %v1193_v0 = vld [vmem:[%s1482_s1 + $0x8] sm:$0x3f]   ;;  %vm443_vm0 = vcmask 1044480   ;;  %vm444_vm1 = vcmask 1045504   ;;  %v1235_v1 = vmov 65535   ;;  %v1194_v5 = vld [vmem:[%s1482_s1] sm:$0xff]  }
   0xd   : > { %v445_v2 = vsel %vm443_vm0, 4294967295, %v1235_v1  ;;  %s1491_s21 = smov (!%p242_p4, %s1004_s21), 63  ;;  %vm394_vm2 = vcmask 220160   ;;  %v1330_v22 = vld [vmem:[%s1483_s2] ss:$0 sm:$0xff]  ;;  %vm849_vm3 = vcmask 519168  }
   0xe   : > { %v446_v3 = vsel %vm444_vm1, %v445_v2, 0  ;;  %s1005_s24 = sshll.u32 %s1491_s21, 2  ;;  %v1335_v24 = vld [vmem:[%s1484_s3] ss:$0 sm:$0xff] }
   0xf   : > { %v448_v4 = vand.u32 %v1193_v0, %v446_v3  ;;  %s1293_s27 = scalar_lea.vmem %s1481_s0, %s1005_s24  ;;  %s1350_s8 = scalar_lea.vmem %s1485_s4, %s1005_s24 }
  0x10   : > { %v1195_v6 = vld [vmem:[%s1293_s27] sm:$0xff]   ;;  %v1197_v8 = vld [vmem:[%s1293_s27 + $0x8] sm:$0xff]   ;;  %v1199_v10 = vld [vmem:[%s1293_s27 + $0x10] sm:$0xff]  }
  0x11   : > { %1128 = vmatprep.subr.bf16.mxu0 %v448_v4  ;;  %1164 = vmatprep.subr.bf16.mxu1 %v448_v4  ;;  %v1196_v7 = vld [vmem:[%s1293_s27 + $0x40] sm:$0xff]   ;;  %v1198_v9 = vld [vmem:[%s1293_s27 + $0x48] sm:$0xff]   ;;  %v1200_v11 = vld [vmem:[%s1293_s27 + $0x50] sm:$0xff]  }
  0x12   : > { %1129 = vmatpush3.bf16.msra.mxu0 %v448_v4  ;;  %1166 = vmatpush3.bf16.msra.mxu1 %v448_v4  ;;  %v1201_v12 = vld [vmem:[%s1293_s27 + $0x18] sm:$0xff]   ;;  %v1203_v14 = vld [vmem:[%s1293_s27 + $0x20] sm:$0xff]   ;;  %v1205_v16 = vld [vmem:[%s1293_s27 + $0x28] sm:$0xff]  }
  0x13   : > { %1130 = vmatprep.subr.bf16.mxu0 %v1194_v5  ;;  %1165 = vmatprep.subr.bf16.mxu1 %v1194_v5  ;;  %v1202_v13 = vld [vmem:[%s1293_s27 + $0x58] sm:$0xff]   ;;  %v1204_v15 = vld [vmem:[%s1293_s27 + $0x60] sm:$0xff]   ;;  %v1206_v17 = vld [vmem:[%s1293_s27 + $0x68] sm:$0xff]  }
  0x14   : > { %1132 = vmatprep.mubr.msk.bf16.mxu0 %vm394_vm2, %v1195_v6  ;;  %1148 = vmatprep.mubr.msk.bf16.mxu1 %vm394_vm2, %v1196_v7  ;;  %v1207_v18 = vld [vmem:[%s1293_s27 + $0x30] sm:$0xff]   ;;  %v1209_v20 = vld [vmem:[%s1293_s27 + $0x38] sm:$0xff]  }
  0x15   : > { %v1208_v19 = vld [vmem:[%s1293_s27 + $0x70] sm:$0xff]   ;;  %v1210_v21 = vld [vmem:[%s1293_s27 + $0x78] sm:$0xff]  }
  0x16   : > { %1131 = vmatpush3.bf16.msra.mxu0 %v1194_v5  ;;  %1167 = vmatpush3.bf16.msra.mxu1 %v1194_v5 }
  0x19   : > { %1133 = vmatmul.mubr.msk.bf16.vlgmr.msra.gmra.mxu0 %vm394_vm2, %v1197_v8  ;;  %1149 = vmatmul.mubr.msk.bf16.vlgmr.msra.gmra.mxu1 %vm394_vm2, %v1198_v9 }
  0x1a   : > { %1136 = vmatprep.mubr.msk.bf16.mxu0 %vm394_vm2, %v1199_v10  ;;  %1152 = vmatprep.mubr.msk.bf16.mxu1 %vm394_vm2, %v1200_v11 }
  0x21   : > { %1137 = vmatmul.mubr.msk.bf16.gmra.mxu0 %vm394_vm2, %v1201_v12  ;;  %1153 = vmatmul.mubr.msk.bf16.gmra.mxu1 %vm394_vm2, %v1202_v13 }
  0x22   : > { %1140 = vmatprep.mubr.msk.bf16.mxu0 %vm394_vm2, %v1203_v14  ;;  %1156 = vmatprep.mubr.msk.bf16.mxu1 %vm394_vm2, %v1204_v15 }
  0x29   : > { %1141 = vmatmul.mubr.msk.bf16.gmra.mxu0 %vm394_vm2, %v1205_v16  ;;  %1157 = vmatmul.mubr.msk.bf16.gmra.mxu1 %vm394_vm2, %v1206_v17 }
  0x2a   : > { %1144 = vmatprep.mubr.msk.bf16.mxu0 %vm394_vm2, %v1207_v18  ;;  %1160 = vmatprep.mubr.msk.bf16.mxu1 %vm394_vm2, %v1208_v19 }
  0x31   : > { %1145 = vmatmul.mubr.msk.bf16.gmra.mxu0 %vm394_vm2, %v1209_v20  ;;  %1161 = vmatmul.mubr.msk.bf16.gmra.mxu1 %vm394_vm2, %v1210_v21 }
  0xd9   : > { %v1134_v23 = vpop.f32.mrf.mxu0  ;;  %v1150_v25 = vpop.f32.mrf.mxu1 }
  0xda   : > { %v620_v26 = vmul.f32 %v1134_v23, %v1330_v22  ;;  %v636_v27 = vmul.f32 %v1150_v25, %v1330_v22 }
  0xdb   : > { %v484_v28 = vpop.f32.mrf.mxu0  ;;  %v548_v29 = vpop.f32.mrf.mxu1 }
  0xdc   : > { %v659_v30 = vadd.f32 %v1335_v24, %v620_v26  ;;  %v675_v31 = vadd.f32 %v1335_v24, %v636_v27  ;;  %v618_v32 = vmul.f32 %v1330_v22, %v484_v28  ;;  %v634_v33 = vmul.f32 %v1330_v22, %v548_v29 }
  0xdd   : > { %v1135_v34 = vpop.f32.mrf.mxu0  ;;  %v1151_v35 = vpop.f32.mrf.mxu1 }
  0xde   : > { %v691_v36 = vmax.f32 %v659_v30, 0.0  ;;  %v707_v37 = vmax.f32 %v675_v31, 0.0  ;;  %v657_v38 = vadd.f32 %v1335_v24, %v618_v32  ;;  %v673_v39 = vadd.f32 %v1335_v24, %v634_v33 }
  0xdf   : > { %v621_v40 = vmul.f32 %v1135_v34, %v1330_v22  ;;  %v637_v41 = vmul.f32 %v1151_v35, %v1330_v22  ;;  %v487_v42 = vpop.f32.mrf.mxu0  ;;  %v551_v43 = vpop.f32.mrf.mxu1 }
  0xe0   : > { %v1080_v44 = vpack.c.bf16 %v691_v36, %v691_v36  ;;  %v1096_v45 = vpack.c.bf16 %v707_v37, %v707_v37  ;;  %v689_v46 = vmax.f32 %v657_v38, 0.0  ;;  %v705_v47 = vmax.f32 %v673_v39, 0.0 }
  0xe1   : > { %v660_v48 = vadd.f32 %v1335_v24, %v621_v40  ;;  %v676_v49 = vadd.f32 %v1335_v24, %v637_v41  ;;  %v619_v50 = vmul.f32 %v1330_v22, %v487_v42  ;;  %v635_v51 = vmul.f32 %v1330_v22, %v551_v43  ;;  %v1138_v52 = vpop.f32.mrf.mxu0  ;;  %v1154_v53 = vpop.f32.mrf.mxu1 }
  0xe2   : > { %852 = vst.msk [vmem:[%s1350_s8 + $0x8] sm:$0xf] %vm849_vm3, %v1080_v44  ;;  %868 = vst.msk [vmem:[%s1350_s8 + $0x48] sm:$0xf] %vm849_vm3, %v1096_v45  ;;  %v1078_v54 = vpack.c.bf16 %v689_v46, %v689_v46  ;;  %v1094_v55 = vpack.c.bf16 %v705_v47, %v705_v47  ;;  %v624_v56 = vmul.f32 %v1138_v52, %v1330_v22 }
  0xe3   : > { %v640_v57 = vmul.f32 %v1154_v53, %v1330_v22  ;;  %v692_v58 = vmax.f32 %v660_v48, 0.0  ;;  %v708_v59 = vmax.f32 %v676_v49, 0.0  ;;  %v658_v60 = vadd.f32 %v1335_v24, %v619_v50  ;;  %v500_v62 = vpop.f32.mrf.mxu0  ;;  %v564_v63 = vpop.f32.mrf.mxu1 }
  0xe4   : > { %v674_v61 = vadd.f32 %v1335_v24, %v635_v51  ;;  %850 = vst.msk [vmem:[%s1350_s8] sm:$0xf] %vm849_vm3, %v1078_v54  ;;  %866 = vst.msk [vmem:[%s1350_s8 + $0x40] sm:$0xf] %vm849_vm3, %v1094_v55  ;;  %v663_v0 = vadd.f32 %v1335_v24, %v624_v56  ;;  %v622_v2 = vmul.f32 %v1330_v22, %v500_v62 }
  0xe5   : > { %v679_v1 = vadd.f32 %v1335_v24, %v640_v57  ;;  %v638_v3 = vmul.f32 %v1330_v22, %v564_v63  ;;  %v1081_v4 = vpack.c.bf16 %v692_v58, %v692_v58  ;;  %v1097_v5 = vpack.c.bf16 %v708_v59, %v708_v59  ;;  %v1139_v8 = vpop.f32.mrf.mxu0  ;;  %v1155_v9 = vpop.f32.mrf.mxu1 }
  0xe6   : > { %v690_v6 = vmax.f32 %v658_v60, 0.0  ;;  %v706_v7 = vmax.f32 %v674_v61, 0.0  ;;  %v695_v10 = vmax.f32 %v663_v0, 0.0  ;;  %v661_v12 = vadd.f32 %v1335_v24, %v622_v2 }
  0xe7   : > { %v711_v11 = vmax.f32 %v679_v1, 0.0  ;;  %v677_v13 = vadd.f32 %v1335_v24, %v638_v3  ;;  %853 = vst.msk [vmem:[%s1350_s8 + $0xc] sm:$0xf] %vm849_vm3, %v1081_v4  ;;  %869 = vst.msk [vmem:[%s1350_s8 + $0x4c] sm:$0xf] %vm849_vm3, %v1097_v5  ;;  %v625_v16 = vmul.f32 %v1139_v8, %v1330_v22  ;;  %v641_v17 = vmul.f32 %v1155_v9, %v1330_v22  ;;  %v503_v18 = vpop.f32.mrf.mxu0  ;;  %v567_v19 = vpop.f32.mrf.mxu1 }
  0xe8   : > { %v1079_v14 = vpack.c.bf16 %v690_v6, %v690_v6  ;;  %v1095_v15 = vpack.c.bf16 %v706_v7, %v706_v7  ;;  %v1084_v20 = vpack.c.bf16 %v695_v10, %v695_v10  ;;  %v693_v23 = vmax.f32 %v661_v12, 0.0 }
  0xe9   : > { %v1100_v21 = vpack.c.bf16 %v711_v11, %v711_v11  ;;  %v709_v25 = vmax.f32 %v677_v13, 0.0  ;;  %v664_v26 = vadd.f32 %v1335_v24, %v625_v16  ;;  %v680_v27 = vadd.f32 %v1335_v24, %v641_v17  ;;  %v1142_v30 = vpop.f32.mrf.mxu0  ;;  %v1158_v31 = vpop.f32.mrf.mxu1 }
  0xea   : > { %851 = vst.msk [vmem:[%s1350_s8 + $0x4] sm:$0xf] %vm849_vm3, %v1079_v14  ;;  %867 = vst.msk [vmem:[%s1350_s8 + $0x44] sm:$0xf] %vm849_vm3, %v1095_v15  ;;  %v623_v28 = vmul.f32 %v1330_v22, %v503_v18  ;;  %v639_v29 = vmul.f32 %v1330_v22, %v567_v19  ;;  %v1082_v32 = vpack.c.bf16 %v693_v23, %v693_v23 }
  0xeb   : > { %856 = vst.msk [vmem:[%s1350_s8 + $0x18] sm:$0xf] %vm849_vm3, %v1084_v20  ;;  %872 = vst.msk [vmem:[%s1350_s8 + $0x58] sm:$0xf] %vm849_vm3, %v1100_v21  ;;  %v1098_v33 = vpack.c.bf16 %v709_v25, %v709_v25  ;;  %v628_v34 = vmul.f32 %v1142_v30, %v1330_v22  ;;  %v644_v35 = vmul.f32 %v1158_v31, %v1330_v22  ;;  %v696_v36 = vmax.f32 %v664_v26, 0.0  ;;  %v516_v40 = vpop.f32.mrf.mxu0  ;;  %v580_v41 = vpop.f32.mrf.mxu1 }
  0xec   : > { %v712_v37 = vmax.f32 %v680_v27, 0.0  ;;  %v662_v38 = vadd.f32 %v1335_v24, %v623_v28  ;;  %v678_v39 = vadd.f32 %v1335_v24, %v639_v29  ;;  %854 = vst.msk [vmem:[%s1350_s8 + $0x10] sm:$0xf] %vm849_vm3, %v1082_v32  ;;  %v626_v44 = vmul.f32 %v1330_v22, %v516_v40 }
  0xed   : > { %870 = vst.msk [vmem:[%s1350_s8 + $0x50] sm:$0xf] %vm849_vm3, %v1098_v33  ;;  %v667_v42 = vadd.f32 %v1335_v24, %v628_v34  ;;  %v683_v43 = vadd.f32 %v1335_v24, %v644_v35  ;;  %v642_v45 = vmul.f32 %v1330_v22, %v580_v41  ;;  %v1085_v46 = vpack.c.bf16 %v696_v36, %v696_v36  ;;  %v1143_v50 = vpop.f32.mrf.mxu0  ;;  %v1159_v51 = vpop.f32.mrf.mxu1 }
  0xee   : > { %v1101_v47 = vpack.c.bf16 %v712_v37, %v712_v37  ;;  %v694_v48 = vmax.f32 %v662_v38, 0.0  ;;  %v710_v49 = vmax.f32 %v678_v39, 0.0  ;;  %v665_v54 = vadd.f32 %v1335_v24, %v626_v44 }
  0xef   : > { %v699_v52 = vmax.f32 %v667_v42, 0.0  ;;  %v715_v53 = vmax.f32 %v683_v43, 0.0  ;;  %v681_v55 = vadd.f32 %v1335_v24, %v642_v45  ;;  %857 = vst.msk [vmem:[%s1350_s8 + $0x1c] sm:$0xf] %vm849_vm3, %v1085_v46  ;;  %v629_v58 = vmul.f32 %v1143_v50, %v1330_v22  ;;  %v519_v60 = vpop.f32.mrf.mxu0  ;;  %v583_v61 = vpop.f32.mrf.mxu1 }
  0xf0   : > { %873 = vst.msk [vmem:[%s1350_s8 + $0x5c] sm:$0xf] %vm849_vm3, %v1101_v47  ;;  %v1083_v56 = vpack.c.bf16 %v694_v48, %v694_v48  ;;  %v1099_v57 = vpack.c.bf16 %v710_v49, %v710_v49  ;;  %v645_v59 = vmul.f32 %v1159_v51, %v1330_v22  ;;  %v697_v0 = vmax.f32 %v665_v54, 0.0 }
  0xf1   : > { %v1088_v62 = vpack.c.bf16 %v699_v52, %v699_v52  ;;  %v1104_v63 = vpack.c.bf16 %v715_v53, %v715_v53  ;;  %v713_v1 = vmax.f32 %v681_v55, 0.0  ;;  %v668_v2 = vadd.f32 %v1335_v24, %v629_v58  ;;  %v1146_v6 = vpop.f32.mrf.mxu0  ;;  %v1162_v7 = vpop.f32.mrf.mxu1 }
  0xf2   : > { %855 = vst.msk [vmem:[%s1350_s8 + $0x14] sm:$0xf] %vm849_vm3, %v1083_v56  ;;  %871 = vst.msk [vmem:[%s1350_s8 + $0x54] sm:$0xf] %vm849_vm3, %v1099_v57  ;;  %v684_v3 = vadd.f32 %v1335_v24, %v645_v59  ;;  %v627_v4 = vmul.f32 %v1330_v22, %v519_v60  ;;  %v643_v5 = vmul.f32 %v1330_v22, %v583_v61 }
  0xf3   : > { %860 = vst.msk [vmem:[%s1350_s8 + $0x28] sm:$0xf] %vm849_vm3, %v1088_v62  ;;  %876 = vst.msk [vmem:[%s1350_s8 + $0x68] sm:$0xf] %vm849_vm3, %v1104_v63  ;;  %v1086_v8 = vpack.c.bf16 %v697_v0, %v697_v0  ;;  %v1102_v9 = vpack.c.bf16 %v713_v1, %v713_v1  ;;  %v632_v10 = vmul.f32 %v1146_v6, %v1330_v22  ;;  %v700_v12 = vmax.f32 %v668_v2, 0.0  ;;  %v532_v16 = vpop.f32.mrf.mxu0  ;;  %v596_v17 = vpop.f32.mrf.mxu1 }
  0xf4   : > { %v648_v11 = vmul.f32 %v1162_v7, %v1330_v22  ;;  %v716_v13 = vmax.f32 %v684_v3, 0.0  ;;  %v666_v14 = vadd.f32 %v1335_v24, %v627_v4  ;;  %v682_v15 = vadd.f32 %v1335_v24, %v643_v5 }
  0xf5   : > { %858 = vst.msk [vmem:[%s1350_s8 + $0x20] sm:$0xf] %vm849_vm3, %v1086_v8  ;;  %874 = vst.msk [vmem:[%s1350_s8 + $0x60] sm:$0xf] %vm849_vm3, %v1102_v9  ;;  %v671_v18 = vadd.f32 %v1335_v24, %v632_v10  ;;  %v630_v20 = vmul.f32 %v1330_v22, %v532_v16  ;;  %v646_v21 = vmul.f32 %v1330_v22, %v596_v17  ;;  %v1147_v28 = vpop.f32.mrf.mxu0  ;;  %v1163_v29 = vpop.f32.mrf.mxu1 }
  0xf6   : > { %v687_v19 = vadd.f32 %v1335_v24, %v648_v11  ;;  %v1089_v23 = vpack.c.bf16 %v700_v12, %v700_v12  ;;  %v1105_v25 = vpack.c.bf16 %v716_v13, %v716_v13  ;;  %v698_v26 = vmax.f32 %v666_v14, 0.0 }
  0xf7   : > { %v714_v27 = vmax.f32 %v682_v15, 0.0  ;;  %v703_v30 = vmax.f32 %v671_v18, 0.0  ;;  %v669_v32 = vadd.f32 %v1335_v24, %v630_v20  ;;  %v685_v33 = vadd.f32 %v1335_v24, %v646_v21  ;;  %v535_v38 = vpop.f32.mrf.mxu0  ;;  %v599_v39 = vpop.f32.mrf.mxu1 }
  0xf8   : > { %v719_v31 = vmax.f32 %v687_v19, 0.0  ;;  %861 = vst.msk [vmem:[%s1350_s8 + $0x2c] sm:$0xf] %vm849_vm3, %v1089_v23  ;;  %877 = vst.msk [vmem:[%s1350_s8 + $0x6c] sm:$0xf] %vm849_vm3, %v1105_v25  ;;  %v1087_v34 = vpack.c.bf16 %v698_v26, %v698_v26  ;;  %v633_v36 = vmul.f32 %v1147_v28, %v1330_v22  ;;  %v649_v37 = vmul.f32 %v1163_v29, %v1330_v22 }
  0xf9   : > { %v1103_v35 = vpack.c.bf16 %v714_v27, %v714_v27  ;;  %v1092_v40 = vpack.c.bf16 %v703_v30, %v703_v30  ;;  %v701_v42 = vmax.f32 %v669_v32, 0.0  ;;  %v717_v43 = vmax.f32 %v685_v33, 0.0 }
  0xfa   : > { %v1108_v41 = vpack.c.bf16 %v719_v31, %v719_v31  ;;  %859 = vst.msk [vmem:[%s1350_s8 + $0x24] sm:$0xf] %vm849_vm3, %v1087_v34  ;;  %v672_v44 = vadd.f32 %v1335_v24, %v633_v36  ;;  %v688_v45 = vadd.f32 %v1335_v24, %v649_v37  ;;  %v631_v46 = vmul.f32 %v1330_v22, %v535_v38 }
  0xfb   : > { %875 = vst.msk [vmem:[%s1350_s8 + $0x64] sm:$0xf] %vm849_vm3, %v1103_v35  ;;  %v647_v47 = vmul.f32 %v1330_v22, %v599_v39  ;;  %864 = vst.msk [vmem:[%s1350_s8 + $0x38] sm:$0xf] %vm849_vm3, %v1092_v40  ;;  %v1090_v48 = vpack.c.bf16 %v701_v42, %v701_v42  ;;  %v1106_v49 = vpack.c.bf16 %v717_v43, %v717_v43 }
  0xfc   : > { %880 = vst.msk [vmem:[%s1350_s8 + $0x78] sm:$0xf] %vm849_vm3, %v1108_v41  ;;  %v704_v50 = vmax.f32 %v672_v44, 0.0  ;;  %v720_v51 = vmax.f32 %v688_v45, 0.0  ;;  %v670_v52 = vadd.f32 %v1335_v24, %v631_v46 }
  0xfd   : > { %v686_v53 = vadd.f32 %v1335_v24, %v647_v47  ;;  %862 = vst.msk [vmem:[%s1350_s8 + $0x30] sm:$0xf] %vm849_vm3, %v1090_v48  ;;  %878 = vst.msk [vmem:[%s1350_s8 + $0x70] sm:$0xf] %vm849_vm3, %v1106_v49 }
  0xfe   : > { %v1093_v22 = vpack.c.bf16 %v704_v50, %v704_v50  ;;  %v1109_v54 = vpack.c.bf16 %v720_v51, %v720_v51  ;;  %v702_v55 = vmax.f32 %v670_v52, 0.0 }
  0xff   : > { %v718_v56 = vmax.f32 %v686_v53, 0.0 }
 0x100   : > { %865 = vst.msk [vmem:[%s1350_s8 + $0x3c] sm:$0xf] %vm849_vm3, %v1093_v22  ;;  %881 = vst.msk [vmem:[%s1350_s8 + $0x7c] sm:$0xf] %vm849_vm3, %v1109_v54  ;;  %v1091_v57 = vpack.c.bf16 %v702_v55, %v702_v55 }
 0x101   : > { %v1107_v58 = vpack.c.bf16 %v718_v56, %v718_v56 }
 0x102   : > { %863 = vst.msk [vmem:[%s1350_s8 + $0x34] sm:$0xf] %vm849_vm3, %v1091_v57 }
 0x103   : > { %879 = vst.msk [vmem:[%s1350_s8 + $0x74] sm:$0xf] %vm849_vm3, %v1107_v58 }
 0x104 PF: > { %s14_s17 = sadd.s32 1, %s1233_s17   ;;  %s1486_s15 = smov %s1229_s16 }
 0x105   : > { %p11_p5 = scmp.ge.s32.totalorder %s14_s17, 4   ;;  %s1487_s16 = smov %s1489_s18 }
 0x107   :  { %13 = sbr.rel (!%p11_p5) target bundleno = 2 (0x2), region = 75 }

</bundles_post_ra>
